<compile_context>
chip_gen: v7x
topology: tpu7x:2x2x1
jax: 0.10.0
libtpu: 0.0.40
codegen_flags: <defaults>
</compile_context>

<pallas_src>
import math
from functools import partial

import jax
import jax.numpy as jnp
from jax.experimental import pallas as pl
from jax.experimental.pallas import tpu as pltpu


# ----------------------------------------------------------------------------- helpers
def flatten_keep_batch(x):
    """Flatten(keep_dims=0): preserve batch dim, flatten the rest (C-order)."""
    if x.ndim <= 1:
        return x
    return x.reshape(x.shape[0], -1)


def _round_up(n, m):
    return ((n + m - 1) // m) * m


def _choose_tile(dim, preferred, lane_align=128, mxu_align=256):
    """Tile for a lane-mapped dim.  Never shrinks below MXU-friendly alignment just
    to divide `dim`; callers pad `dim` UP to a tile multiple instead (zero padding
    is exact for a matmul)."""
    dim_min = _round_up(dim, lane_align)
    if dim_min <= lane_align:
        return lane_align                      # tiny dim: single 128-wide tile
    align = mxu_align if dim_min >= mxu_align else lane_align
    t = min(preferred, _round_up(dim, align))
    return max((t // align) * align, align)


def _fit_tile(dim, t, align=128):
    """Clamp tile so it divides an already-padded dim (no-op when prep and forward
    use the same tile preferences; only triggers on mismatched preferences)."""
    t = max(min(t, dim), align)
    t = max((t // align) * align, align)
    while t > align and dim % t:
        t -= align
    return t


def _derive_vmem_limit():
    """~3/4 of physical per-core VMEM, capped at 96 MiB.
    v5e/v6e (128 MiB) -> 96 MiB; v7x (64 MiB) -> 48 MiB.  Fallback assumes v7x."""
    try:
        info = pltpu.get_tpu_info()
        cap = int(getattr(info, "vmem_capacity_bytes", 64 * 1024 * 1024))
    except Exception:  # query unavailable (e.g. interpret mode)
        cap = 64 * 1024 * 1024
    return int(min(cap * 3 // 4, 96 * 1024 * 1024))


_VMEM_LIMIT_BYTES = _derive_vmem_limit()


# ----------------------------------------------------------------------------- param prep
def prepare_dense_params(weight, bias=None, *, compute_dtype=jnp.bfloat16,
                         tn=512, tk=1024):
    """One-time parameter prep (keep OUTSIDE the jit'd forward / training step).

    weight: (units, in_units)  -- PyTorch nn.Linear layout
    bias:   (units,) or None
    compute_dtype: dtype the MXU is fed (bf16 default; pass jnp.float32 or None
                   for the full-precision path).

    Returns (w_t_pad, b_pad):
      w_t_pad: (K_pad, N_pad) = weight.T cast to compute_dtype, zero-padded to
               multiples of the chosen K/N tiles (so the forward never shrinks
               its tiles or re-pads the weight).
      b_pad:   (1, N_pad) float32 bias (zeros if bias is None).
    """
    units, k = weight.shape
    w_dtype = weight.dtype if compute_dtype is None else jnp.dtype(compute_dtype)
    tk_pref = tk if jnp.dtype(w_dtype).itemsize < 4 else min(tk, 512)

    tn_ = _choose_tile(units, tn)
    tk_ = _choose_tile(k, tk_pref)
    n_pad = _round_up(units, tn_)
    k_pad = _round_up(k, tk_)

    w_t = weight.T.astype(w_dtype)
    w_t_pad = jnp.zeros((k_pad, n_pad), w_dtype).at[:k, :units].set(w_t)
    b_pad = jnp.zeros((1, n_pad), jnp.float32)
    if bias is not None:
        b_pad = b_pad.at[0, :units].set(bias.astype(jnp.float32))
    return w_t_pad, b_pad


# ----------------------------------------------------------------------------- kernels
def _dense_kernel_single_k(x_ref, w_ref, b_ref, o_ref):
    """K fits in one tile: no accumulator round-trip, no predicated regions."""
    x = x_ref[...]
    w = w_ref[...]
    if x.dtype != w.dtype:
        x = x.astype(w.dtype)          # trace-time branch; W is already MXU dtype
    acc = jnp.dot(x, w, preferred_element_type=jnp.float32)
    o_ref[...] = (acc + b_ref[...]).astype(o_ref.dtype)


def _dense_kernel_acc(x_ref, w_ref, b_ref, o_ref, acc_ref):
    """Tiled-K accumulator kernel; K is the trailing 'arbitrary' grid axis."""
    k = pl.program_id(2)

    @pl.when(k == 0)
    def _():
        acc_ref[...] = jnp.zeros_like(acc_ref)

    x = x_ref[...]
    w = w_ref[...]
    if x.dtype != w.dtype:
        x = x.astype(w.dtype)
    acc_ref[...] += jnp.dot(x, w, preferred_element_type=jnp.float32)

    @pl.when(k == pl.num_programs(2) - 1)
    def _():
        # Single contiguous lane-dense (tm, tn) store; bias added once in f32.
        o_ref[...] = (acc_ref[...] + b_ref[...]).astype(o_ref.dtype)


# ----------------------------------------------------------------------------- forward
@partial(jax.jit, static_argnames=("units", "tm", "tn", "tk"))
def dense_forward(x, w_t_pad, b_pad, units, *, tm=512, tn=512, tk=1024):
    """Pallas Dense forward: flatten(keep batch) -> x @ W.T + b.

    x:        (B, ...) any rank; 1-D input is treated like torch (returns (units,)).
    w_t_pad:  (K_pad, N_pad) from prepare_dense_params (already in compute dtype)
    b_pad:    (1, N_pad) float32 from prepare_dense_params
    units:    original out_features (static int) -- output is sliced back to it.
    """
    squeeze = x.ndim == 1
    if squeeze:
        x = x[None]
    x2 = flatten_keep_batch(x)
    out_dtype = x2.dtype
    M, K = x2.shape
    K_pad, N_pad = w_t_pad.shape
    w_dtype = w_t_pad.dtype

    # ---- tile selection (padded dims from prep are already tile multiples) ----
    tk_pref = tk if w_dtype.itemsize < 4 else min(tk, 512)
    tn_ = _fit_tile(N_pad, _choose_tile(N_pad, tn))
    tk_ = _fit_tile(K_pad, _choose_tile(K_pad, tk_pref))
    tm_ = max((min(tm, _round_up(M, 8)) // 8) * 8, 8)
    M_pad = _round_up(M, tm_)

    grid_m = M_pad // tm_
    grid_n = N_pad // tn_
    grid_k = K_pad // tk_

    # Cast x once in the wrapper when its tiles are re-streamed across N tiles;
    # for a single N tile the per-tile in-kernel cast is cheaper (one f32 read).
    if x2.dtype != w_dtype and grid_n >= 2:
        x2 = x2.astype(w_dtype)

    # Pad batch to full sublanes and K to the padded weight; zero rows/cols
    # contribute nothing to the matmul, so results are exact.
    if (M_pad, K_pad) != (M, K):
        x2 = jnp.pad(x2, ((0, M_pad - M), (0, K_pad - K)))

    # Advisory cost: account for operand re-reads across the grid.
    out_itemsize = jnp.dtype(out_dtype).itemsize
    cost = pl.CostEstimate(
        flops=2 * M_pad * K_pad * N_pad,
        transcendentals=0,
        bytes_accessed=(x2.size * x2.dtype.itemsize * grid_n
                        + w_t_pad.size * w_dtype.itemsize * grid_m
                        + b_pad.size * b_pad.dtype.itemsize * grid_m
                        + M_pad * N_pad * out_itemsize),
    )

    out_shape = jax.ShapeDtypeStruct((M_pad, N_pad), out_dtype)

    if grid_k == 1:
        # Degenerate reduction: whole K in one tile -> write straight to o_ref.
        out = pl.pallas_call(
            _dense_kernel_single_k,
            out_shape=out_shape,
            grid_spec=pltpu.PrefetchScalarGridSpec(
                num_scalar_prefetch=0,
                grid=(grid_m, grid_n),
                in_specs=[
                    pl.BlockSpec((tm_, K_pad), lambda i, j: (i, 0)),   # x tile
                    pl.BlockSpec((K_pad, tn_), lambda i, j: (0, j)),   # W^T tile
                    pl.BlockSpec((1, tn_), lambda i, j: (0, j)),       # bias tile
                ],
                out_specs=pl.BlockSpec((tm_, tn_), lambda i, j: (i, j)),
            ),
            compiler_params=pltpu.CompilerParams(
                dimension_semantics=("parallel", "parallel"),
                vmem_limit_bytes=_VMEM_LIMIT_BYTES,
            ),
            cost_estimate=cost,
        )(x2, w_t_pad, b_pad)
    else:
        # TODO(synk): if still HBM-bound, try pipeline_mode=pl.Buffered(3) on the
        # W^T BlockSpec once a sweep confirms it helps on the target generation.
        out = pl.pallas_call(
            _dense_kernel_acc,
            out_shape=out_shape,
            grid_spec=pltpu.PrefetchScalarGridSpec(
                num_scalar_prefetch=0,
                grid=(grid_m, grid_n, grid_k),
                in_specs=[
                    pl.BlockSpec((tm_, tk_), lambda i, j, k: (i, k)),  # x tile
                    pl.BlockSpec((tk_, tn_), lambda i, j, k: (k, j)),  # W^T tile
                    pl.BlockSpec((1, tn_), lambda i, j, k: (0, j)),    # bias tile
                ],
                out_specs=pl.BlockSpec((tm_, tn_), lambda i, j, k: (i, j)),
                scratch_shapes=[pltpu.VMEM((tm_, tn_), jnp.float32)],
            ),
            compiler_params=pltpu.CompilerParams(
                dimension_semantics=("parallel", "parallel", "arbitrary"),
                vmem_limit_bytes=_VMEM_LIMIT_BYTES,
            ),
            cost_estimate=cost,
        )(x2, w_t_pad, b_pad)

    # NOTE: if the consumer can work on the padded (M_pad, N_pad) slab, defer this
    # slice into the consumer to avoid an extra XLA copy over padded bytes.
    out = out[:M, :units]
    if squeeze:
        out = out[0]
    return out


# ----------------------------------------------------------------------------- demo / test
if __name__ == "__main__":
    key = jax.random.PRNGKey(0)
    kx, kw, kb = jax.random.split(key, 3)

    # Small shapes consistent with the module: NCHW input, Dense(units=32).
    B, C, H, W = 2, 4, 16, 16
    units = 32
    in_units = C * H * W  # 1024 after Flatten(keep_dims=0)

    x = jax.random.normal(kx, (B, C, H, W), dtype=jnp.float32)

    # Deterministic nn.Linear-style init: U(-1/sqrt(in), 1/sqrt(in)).
    bound = 1.0 / math.sqrt(in_units)
    weight = jax.random.uniform(kw, (units, in_units), jnp.float32, -bound, bound)
    bias = jax.random.uniform(kb, (units,), jnp.float32, -bound, bound)

    ref = flatten_keep_batch(x) @ weight.T + bias

    # 1) f32 weight path (tight tolerance).  f32 clamps tk to 512 -> 2 K steps
    #    -> exercises the accumulator kernel.
    w_f32, b_f32 = prepare_dense_params(weight, bias, compute_dtype=jnp.float32)
    out_f32 = jax.block_until_ready(dense_forward(x, w_f32, b_f32, units))
    assert out_f32.shape == (B, units)
    assert jnp.allclose(out_f32, ref, atol=1e-5, rtol=1e-5)

    # 2) default bf16 weight path (MXU-native weights, f32 accumulation).
    #    K=1024 fits one tk=1024 tile -> exercises the single-K kernel.
    w_bf16, b_bf16 = prepare_dense_params(weight, bias)
    out_bf16 = jax.block_until_ready(dense_forward(x, w_bf16, b_bf16, units))
    assert out_bf16.shape == (B, units)
    assert jnp.allclose(out_bf16, ref, atol=5e-2, rtol=5e-2)

    # 3) bf16 weights with a forced small K tile -> multi-K accumulator path in bf16.
    out_bf16_mk = jax.block_until_ready(
        dense_forward(x, w_bf16, b_bf16, units, tk=256))
    assert out_bf16_mk.shape == (B, units)
    assert jnp.allclose(out_bf16_mk, ref, atol=5e-2, rtol=5e-2)

    print("KERNEL_OK")
</pallas_src>

<mosaic_0001>
module attributes {stable_mosaic.version = 11 : i64} {
  func.func @_dense_kernel_acc(%arg0: i32, %arg1: i32, %arg2: i32, %arg3: memref<8x512xf32, #tpu.memory_space<vmem>>, %arg4: memref<512x128xf32, #tpu.memory_space<vmem>>, %arg5: memref<1x128xf32, #tpu.memory_space<vmem>>, %arg6: memref<8x128xf32, #tpu.memory_space<vmem>>, %arg7: memref<8x128xf32, #tpu.memory_space<vmem>>) attributes {dimension_semantics = [#tpu.dimension_semantics<parallel>, #tpu.dimension_semantics<parallel>, #tpu.dimension_semantics<arbitrary>], iteration_bounds = array<i64: 1, 1, 2>, scalar_prefetch = 0 : i64, scratch_operands = 1 : i64, tpu.core_type = #tpu.core_type<tc>, window_params = [{transform_indices = @transform_0, window_bounds = array<i64: 8, 512>}, {transform_indices = @transform_1, window_bounds = array<i64: 512, 128>}, {transform_indices = @transform_2, window_bounds = array<i64: 1, 128>}, {transform_indices = @transform_3, window_bounds = array<i64: 8, 128>}]} {
    %c0_i32 = arith.constant 0 : i32
    %0 = arith.cmpi eq, %arg2, %c0_i32 : i32
    %1 = arith.extui %0 : i1 to i32
    %c0_i32_0 = arith.constant 0 : i32
    %2 = arith.cmpi ne, %1, %c0_i32_0 : i32
    scf.if %2 {
      %cst_9 = arith.constant 0.000000e+00 : f32
      %12 = vector.broadcast %cst_9 : f32 to vector<8x128xf32>
      %c0_10 = arith.constant 0 : index
      %c0_11 = arith.constant 0 : index
      %13 = vector.load %arg7[%c0_10, %c0_11] : memref<8x128xf32, #tpu.memory_space<vmem>>, vector<8x128xf32>
      tpu.vector_store %arg7[%c0_10, %c0_11], %12 {strides = array<i32>} : memref<8x128xf32, #tpu.memory_space<vmem>>, vector<8x128xf32>,
    } else {
    }
    %c0 = arith.constant 0 : index
    %c0_1 = arith.constant 0 : index
    %3 = vector.load %arg3[%c0, %c0_1] : memref<8x512xf32, #tpu.memory_space<vmem>>, vector<8x512xf32>
    %c0_2 = arith.constant 0 : index
    %c0_3 = arith.constant 0 : index
    %4 = vector.load %arg4[%c0_2, %c0_3] : memref<512x128xf32, #tpu.memory_space<vmem>>, vector<512x128xf32>
    %c0_4 = arith.constant 0 : index
    %c0_5 = arith.constant 0 : index
    %5 = vector.load %arg7[%c0_4, %c0_5] : memref<8x128xf32, #tpu.memory_space<vmem>>, vector<8x128xf32>
    %cst = arith.constant dense<0.000000e+00> : vector<8x128xf32>
    %6 = tpu.matmul %3, %4, %cst {dimension_numbers = #tpu.dot_dimension_numbers<[1], [0], [0], [1], [0, 0, 1, 1], [], []>} : vector<8x512xf32>, vector<512x128xf32>, vector<8x128xf32> -> vector<8x128xf32>
    %7 = arith.addf %5, %6 : vector<8x128xf32>
    %c0_6 = arith.constant 0 : index
    %c0_7 = arith.constant 0 : index
    %8 = vector.load %arg7[%c0_6, %c0_7] : memref<8x128xf32, #tpu.memory_space<vmem>>, vector<8x128xf32>
    tpu.vector_store %arg7[%c0_6, %c0_7], %7 {strides = array<i32>} : memref<8x128xf32, #tpu.memory_space<vmem>>, vector<8x128xf32>,
    %c1_i32 = arith.constant 1 : i32
    %9 = arith.cmpi eq, %arg2, %c1_i32 : i32
    %10 = arith.extui %9 : i1 to i32
    %c0_i32_8 = arith.constant 0 : i32
    %11 = arith.cmpi ne, %10, %c0_i32_8 : i32
    scf.if %11 {
      %c0_9 = arith.constant 0 : index
      %c0_10 = arith.constant 0 : index
      %12 = vector.load %arg7[%c0_9, %c0_10] : memref<8x128xf32, #tpu.memory_space<vmem>>, vector<8x128xf32>
      %c0_11 = arith.constant 0 : index
      %c0_12 = arith.constant 0 : index
      %13 = vector.load %arg5[%c0_11, %c0_12] : memref<1x128xf32, #tpu.memory_space<vmem>>, vector<1x128xf32>
      %14 = vector.broadcast %13 : vector<1x128xf32> to vector<8x128xf32>
      %15 = arith.addf %12, %14 : vector<8x128xf32>
      %c0_13 = arith.constant 0 : index
      %c0_14 = arith.constant 0 : index
      %16 = vector.load %arg6[%c0_13, %c0_14] : memref<8x128xf32, #tpu.memory_space<vmem>>, vector<8x128xf32>
      tpu.vector_store %arg6[%c0_13, %c0_14], %15 {strides = array<i32>} : memref<8x128xf32, #tpu.memory_space<vmem>>, vector<8x128xf32>,
    } else {
    }
    return
  }
  func.func @transform_0(%arg0: i32, %arg1: i32, %arg2: i32) -> (i32, i32) {
    %c0_i32 = arith.constant 0 : i32
    return %arg0, %arg2 : i32, i32
  }
  func.func @transform_1(%arg0: i32, %arg1: i32, %arg2: i32) -> (i32, i32) {
    %c0_i32 = arith.constant 0 : i32
    return %arg2, %arg1 : i32, i32
  }
  func.func @transform_2(%arg0: i32, %arg1: i32, %arg2: i32) -> (i32, i32) {
    %c0_i32 = arith.constant 0 : i32
    %c0_i32_0 = arith.constant 0 : i32
    return %c0_i32, %arg1 : i32, i32
  }
  func.func @transform_3(%arg0: i32, %arg1: i32, %arg2: i32) -> (i32, i32) {
    %c0_i32 = arith.constant 0 : i32
    return %arg0, %arg1 : i32, i32
  }
}

</mosaic_0001>

<bundles_post_ra>
// kernel: dense_forward.1
= control target key start
LH: loop header
LB: loop body
LE: loop exit
PB: predicated region body
PF: predicated region fallthrough
CT: control target
= control target key end

     0   :  { %8 = vsyncpa [#allocation4], 0  ;;  %s1134_s0 = inlined_call_operand.vmem [shape: f32[8,1024], index: 0, kind: input, shape index: {}]   ;;  %s1135_s1 = inlined_call_operand.hbm [shape: f32[1024,128], index: 1, kind: input, shape index: {}]   ;;  %s1136_s2 = inlined_call_operand.vmem [shape: f32[1,128], index: 2, kind: input, shape index: {}]   ;;  %s1137_s3 = inlined_call_operand.vmem [shape: f32[8,128], index: 3, kind: output, shape index: {}]  }
   0x1   :  { %10 = vsyncpa [#allocation4 + $0x1], 0  ;;  %s931_s12 = smov 0   ;;  %s933_s13 = smov 0  }
   0x2   :  { %s935_s14 = smov 0   ;;  %s937_s15 = smov 0  }
   0x3   :  { %s939_s16 = smov 0   ;;  %s941_s17 = smov 0  }
   0x4 LB: > { %s615_s18 = sadd.s32 4294967295, %s905_s17   ;;  %s28_s19 = sadd.s32 1, %s901_s16  ;;  %s905_s17 = sphi %s941_s17, %s16_s17   ;;  %s901_s16 = sphi %s939_s16, %s1145_s16   ;;  %s897_s15 = sphi %s937_s15, %s1144_s15   ;;  %s893_s14 = sphi %s935_s14, %s1143_s14   ;;  %s889_s13 = sphi %s933_s13, %s1142_s13   ;;  %s885_s12 = sphi %s931_s12, %s1141_s12  }
   0x5   : > { %p29_p0 = scmp.ge.s32.totalorder %s28_s19, 2  ;;  %s72_s20 = sadd.s32 1, %s893_s14 }
   0x6   : > { %p79_p1 = scmp.ne.s32.totalorder %s893_s14, %s889_s13  ;;  %p80_p2 = scmp.eq.s32.totalorder %s905_s17, 0 }
   0x7   : > { %s1147_s19 = smov (%p29_p0, %s28_s19), 0  ;;  %p85_p4 = scmp.ne.s32.totalorder %s889_s13, %s885_s12 }
   0x8   : > { %p967_p3 = por %p80_p2, %p79_p1  ;;  %s67_s22 = ssub.s32 %s901_s16, %s1147_s19 }
   0x9   : > { %p86_p5 = scmp.eq.s32.totalorder %s615_s18, 0  ;;  %p70_p6 = scmp.eq.s32.totalorder %s67_s22, 0 }
   0xa   : > { %p773_p8 = scmp.lt.s32.totalorder %s905_s17, 2  ;;  %s182_s25 = sand.u32 1, %s893_s14  }
   0xb   : > { %p974_p7 = por %p86_p5, %p85_p4  ;;  %s632_s26 = sshll.u32 %s901_s16, 13 }
   0xc   : > { %s980_s24 = scalar_select %p70_p6, %s893_s14, %s72_s20  }
   0xd   : > { %s619_s27 = sshll.u32 %s182_s25, 9  ;;  %s987_s30 = scalar_lea.hbm %s1135_s1, %s632_s26 }
   0xe   : > { %s186_s4 = scalar_lea.vmem [#allocation3], %s619_s27  ;;  %p991_p9 = pnand %p773_p8, %p967_p3 }
   0xf   : > { %s194_s5 = sshll.u32 %s186_s4, 4  ;;  %s997_s7 = scalar_lea.sflag [#allocation4], %s182_s25  ;;  %s995_s5 = int_to_ptr.vmem [resolvable:$true] %s194_s5 }
  0x10   : > { %s825_s8 = scalar_lea.hbm %s987_s30, 8192  ;;  %p827_p11 = pneg %p991_p9 }
  0x11   : > { %p826_p10 = scmp.ne.s32.totalorder %s987_s30, %s825_s8  ;;  %s830_s11 = scalar_lea.hbm %s1135_s1, 16384 }
  0x12   : > { %p831_p0 = scmp.lt.u32.totalorder %s987_s30, %s1135_s1  ;;  %p832_p1 = scmp.lt.u32.totalorder %s830_s11, %s825_s8 }
  0x13   : > { %p828_p12 = pnand %p827_p11, %p826_p10  ;;  %p834_p3 = scmp.lt.u32.totalorder %s825_s8, %s987_s30 }
  0x14   : > { %p833_p2 = por %p832_p1, %p831_p0 }
  0x15   : > { %p829_p13 = pneg %p828_p12 }
  0x16   : > { %p835_p4 = por %p834_p3, %p833_p2 }
  0x18   : > { %p836_p5 = pnand %p835_p4, %p829_p13 }
  0x1a   : > { %839 = shalt.err (!%p836_p5)
}
  0x1b   : > { %s840_s20 = scalar_lea.vmem %s995_s5, 8192  ;;  %s907_s21 = smov [#allocation3]  }
  0x1c   : > { %p841_p6 = scmp.ne.s32.totalorder %s995_s5, %s840_s20  ;;  %s845_s22 = sshll.u32 %s907_s21, 4  ;;  %s846_s22 = int_to_ptr.vmem [resolvable:$false] %s845_s22 }
  0x1d   : > { %s847_s25 = scalar_lea.vmem %s846_s22, 16384  ;;  %p848_p12 = scmp.lt.s32.totalorder %s995_s5, %s846_s22 }
  0x1e   : > { %p843_p8 = pnand %p841_p6, %p827_p11  ;;  %p849_p0 = scmp.lt.s32.totalorder %s847_s25, %s840_s20 }
  0x20   : > { %p844_p10 = pneg %p843_p8  ;;  %p850_p1 = por %p849_p0, %p848_p12 }
  0x22   : > { %p851_p2 = pnand %p850_p1, %p844_p10 }
  0x24   : > { %854 = shalt.err (!%p851_p2)
}
  0x25   : > { %s908_s26 = smov 128   ;;  %s909_s27 = smov 8  }
  0x26   : > { %772 = dma.hbm_to_vmem [thread:$0]  (!%p991_p9), %s987_s30, 8192, %s995_s5, %s997_s7, %s908_s26, %s908_s26, %s909_s27  }
  0x27   : > { %p622_p11 = scmp.ge.s32.totalorder %s905_s17, 1  ;;  %p202_p13 = scmp.lt.s32.totalorder %s905_s17, 3 }
  0x29   : > { %p203_p3 = pnand %p622_p11, %p202_p13 }
  0x2a   : > { %s208_s28 = sand.u32 (!%p203_p3), 1, %s889_s13  }
  0x2b   : > { %206 = sbr.rel (%p203_p3) target bundleno = 327 (0x147), region = 32  ;;  %s623_s29 = sshll.u32 (!%p203_p3), %s208_s28, 9 }
  0x2c   : > { %s209_s4 = scalar_lea.sflag (!%p203_p3), [#allocation4], %s208_s28  ;;  %s1028_s8 = scalar_lea.vmem (!%p203_p3), [#allocation3], %s623_s29 }
  0x32   : > { %880 = dma.done.wait (%p974_p7), %s209_s4, 8192  }
  0x33   : > { %882 = vsyncadd (%p974_p7), %s209_s4, 4294959104  ;;  %s624_s9 = sshll.u32 %s897_s15, 2  ;;  %p626_p9 = scmp.ne.s32.totalorder %s897_s15, 0 }
  0x34   : > { %p252_p4 = scmp.lt.s32.totalorder %s624_s9, 7  ;;  %v910_v0 = vmov (!%p626_p9), 0.0  }
  0x35   : > { %273 = sbr.rel (%p626_p9) target bundleno = 60 (0x3c), region = 40  ;;  %274 = vst [vmem:[#allocation2] sm:$0xff] (!%p626_p9), %v910_v0 }
  0x36   : > { %s1149_s9 = smov (!%p252_p4, %s624_s9), 7 }
  0x37   : > { %s625_s30 = sshll.u32 %s1149_s9, 3 }
  0x38   : > { %s1038_s7 = scalar_lea.vmem %s1134_s0, %s625_s30 }
  0x3c PF: > { %v295_v1 = vld [vmem:[%s1028_s8 + $0x80] sm:$0xff]  ;;  %v296_v2 = vld [vmem:[%s1028_s8 + $0x88] sm:$0xff]  ;;  %v297_v12 = vld [vmem:[%s1028_s8 + $0x90] sm:$0xff]  ;;  %p627_p7 = scmp.ne.s32.totalorder %s897_s15, 1 }
  0x3d   : > { %v327_v3 = vld [vmem:[%s1028_s8 + $0x180] sm:$0xff]  ;;  %v703_v4 = vpack.c.bf16 %v296_v2, %v295_v1  ;;  %v328_v5 = vld [vmem:[%s1028_s8 + $0x188] sm:$0xff]  ;;  %v298_v14 = vld [vmem:[%s1028_s8 + $0x98] sm:$0xff] }
  0x3e   : > { %v279_v6 = vld [vmem:[%s1028_s8] sm:$0xff]  ;;  %v280_v7 = vld [vmem:[%s1028_s8 + $0x8] sm:$0xff]  ;;  %v735_v8 = vpack.c.bf16 %v328_v5, %v327_v3  ;;  %v329_v15 = vld [vmem:[%s1028_s8 + $0x190] sm:$0xff]  ;;  %v707_v17 = vpack.c.bf16 %v298_v14, %v297_v12 }
  0x3f   : > { %v705_v9 = vpack.c.bf16 %v280_v7, %v279_v6  ;;  %v311_v10 = vld [vmem:[%s1028_s8 + $0x100] sm:$0xff]  ;;  %v312_v11 = vld [vmem:[%s1028_s8 + $0x108] sm:$0xff]  ;;  %704 = vmatprep.subr.bf16.mxu0 %v703_v4  ;;  %v330_v16 = vld [vmem:[%s1028_s8 + $0x198] sm:$0xff] }
  0x40   : > { %v737_v13 = vpack.c.bf16 %v312_v11, %v311_v10  ;;  %736 = vmatprep.subr.bf16.mxu1 %v735_v8  ;;  %v739_v18 = vpack.c.bf16 %v330_v16, %v329_v15  ;;  %v281_v19 = vld [vmem:[%s1028_s8 + $0x10] sm:$0xff]  ;;  %v282_v20 = vld [vmem:[%s1028_s8 + $0x18] sm:$0xff]  ;;  %v299_v24 = vld [vmem:[%s1028_s8 + $0xa0] sm:$0xff] }
  0x41   : > { %706 = vmatpush3.bf16.msra.mxu0 %v705_v9  ;;  %v313_v21 = vld [vmem:[%s1028_s8 + $0x110] sm:$0xff]  ;;  %v709_v22 = vpack.c.bf16 %v282_v20, %v281_v19  ;;  %v314_v23 = vld [vmem:[%s1028_s8 + $0x118] sm:$0xff]  ;;  %v300_v25 = vld [vmem:[%s1028_s8 + $0xa8] sm:$0xff] }
  0x42   : > { %738 = vmatpush3.bf16.msra.mxu1 %v737_v13  ;;  %708 = vmatprep.subr.bf16.mxu0 %v707_v17  ;;  %v741_v26 = vpack.c.bf16 %v314_v23, %v313_v21  ;;  %v711_v27 = vpack.c.bf16 %v300_v25, %v299_v24  ;;  %v331_v28 = vld [vmem:[%s1028_s8 + $0x1a0] sm:$0xff]  ;;  %v332_v29 = vld [vmem:[%s1028_s8 + $0x1a8] sm:$0xff]  ;;  %v301_v36 = vld [vmem:[%s1028_s8 + $0xb0] sm:$0xff] }
  0x43   : > { %740 = vmatprep.subr.bf16.mxu1 %v739_v18  ;;  %v283_v30 = vld [vmem:[%s1028_s8 + $0x20] sm:$0xff]  ;;  %v743_v31 = vpack.c.bf16 %v332_v29, %v331_v28  ;;  %v284_v32 = vld [vmem:[%s1028_s8 + $0x28] sm:$0xff]  ;;  %v302_v37 = vld [vmem:[%s1028_s8 + $0xb8] sm:$0xff] }
  0x44   : > { %v315_v33 = vld [vmem:[%s1028_s8 + $0x120] sm:$0xff]  ;;  %v316_v34 = vld [vmem:[%s1028_s8 + $0x128] sm:$0xff]  ;;  %v713_v35 = vpack.c.bf16 %v284_v32, %v283_v30  ;;  %v333_v38 = vld [vmem:[%s1028_s8 + $0x1b0] sm:$0xff]  ;;  %v715_v40 = vpack.c.bf16 %v302_v37, %v301_v36 }
  0x45   : > { %710 = vmatpush3.bf16.msra.mxu0 %v709_v22  ;;  %v745_v39 = vpack.c.bf16 %v316_v34, %v315_v33  ;;  %v334_v41 = vld [vmem:[%s1028_s8 + $0x1b8] sm:$0xff]  ;;  %v285_v42 = vld [vmem:[%s1028_s8 + $0x30] sm:$0xff]  ;;  %v303_v47 = vld [vmem:[%s1028_s8 + $0xc0] sm:$0xff] }
  0x46   : > { %742 = vmatpush3.bf16.msra.mxu1 %v741_v26  ;;  %712 = vmatprep.subr.bf16.mxu0 %v711_v27  ;;  %v286_v43 = vld [vmem:[%s1028_s8 + $0x38] sm:$0xff]  ;;  %v747_v44 = vpack.c.bf16 %v334_v41, %v333_v38  ;;  %v317_v45 = vld [vmem:[%s1028_s8 + $0x130] sm:$0xff]  ;;  %v304_v48 = vld [vmem:[%s1028_s8 + $0xc8] sm:$0xff] }
  0x47   : > { %744 = vmatprep.subr.bf16.mxu1 %v743_v31  ;;  %v318_v46 = vld [vmem:[%s1028_s8 + $0x138] sm:$0xff]  ;;  %v335_v49 = vld [vmem:[%s1028_s8 + $0x1c0] sm:$0xff]  ;;  %v336_v50 = vld [vmem:[%s1028_s8 + $0x1c8] sm:$0xff]  ;;  %v717_v51 = vpack.c.bf16 %v286_v43, %v285_v42  ;;  %v719_v53 = vpack.c.bf16 %v304_v48, %v303_v47 }
  0x48   : > { %v749_v52 = vpack.c.bf16 %v318_v46, %v317_v45  ;;  %v287_v54 = vld [vmem:[%s1028_s8 + $0x40] sm:$0xff]  ;;  %v288_v55 = vld [vmem:[%s1028_s8 + $0x48] sm:$0xff]  ;;  %v751_v57 = vpack.c.bf16 %v336_v50, %v335_v49  ;;  %v305_v59 = vld [vmem:[%s1028_s8 + $0xd0] sm:$0xff] }
  0x49   : > { %714 = vmatpush3.bf16.msra.mxu0 %v713_v35  ;;  %v319_v56 = vld [vmem:[%s1028_s8 + $0x140] sm:$0xff]  ;;  %v320_v58 = vld [vmem:[%s1028_s8 + $0x148] sm:$0xff]  ;;  %v306_v60 = vld [vmem:[%s1028_s8 + $0xd8] sm:$0xff]  ;;  %v721_v63 = vpack.c.bf16 %v288_v55, %v287_v54 }
  0x4a   : > { %746 = vmatpush3.bf16.msra.mxu1 %v745_v39  ;;  %716 = vmatprep.subr.bf16.mxu0 %v715_v40  ;;  %v337_v61 = vld [vmem:[%s1028_s8 + $0x1d0] sm:$0xff]  ;;  %v338_v62 = vld [vmem:[%s1028_s8 + $0x1d8] sm:$0xff]  ;;  %v753_v0 = vpack.c.bf16 %v320_v58, %v319_v56  ;;  %v723_v1 = vpack.c.bf16 %v306_v60, %v305_v59  ;;  %v307_v7 = vld [vmem:[%s1028_s8 + $0xe0] sm:$0xff] }
  0x4b   : > { %748 = vmatprep.subr.bf16.mxu1 %v747_v44  ;;  %v289_v2 = vld [vmem:[%s1028_s8 + $0x50] sm:$0xff]  ;;  %v290_v3 = vld [vmem:[%s1028_s8 + $0x58] sm:$0xff]  ;;  %v755_v5 = vpack.c.bf16 %v338_v62, %v337_v61  ;;  %v308_v8 = vld [vmem:[%s1028_s8 + $0xe8] sm:$0xff] }
  0x4c   : > { %v321_v4 = vld [vmem:[%s1028_s8 + $0x150] sm:$0xff]  ;;  %v322_v6 = vld [vmem:[%s1028_s8 + $0x158] sm:$0xff]  ;;  %v339_v9 = vld [vmem:[%s1028_s8 + $0x1e0] sm:$0xff]  ;;  %v725_v11 = vpack.c.bf16 %v290_v3, %v289_v2  ;;  %v727_v15 = vpack.c.bf16 %v308_v8, %v307_v7 }
  0x4d   : > { %718 = vmatpush3.bf16.msra.mxu0 %v717_v51  ;;  %v340_v10 = vld [vmem:[%s1028_s8 + $0x1e8] sm:$0xff]  ;;  %v291_v12 = vld [vmem:[%s1028_s8 + $0x60] sm:$0xff]  ;;  %v757_v14 = vpack.c.bf16 %v322_v6, %v321_v4  ;;  %v278_v18 = vld [vmem:[%s1038_s7 + $0x18] sm:$0xff] }
  0x4e   : > { %750 = vmatpush3.bf16.msra.mxu1 %v749_v52  ;;  %720 = vmatprep.subr.bf16.mxu0 %v719_v53  ;;  %v292_v13 = vld [vmem:[%s1028_s8 + $0x68] sm:$0xff]  ;;  %v323_v16 = vld [vmem:[%s1028_s8 + $0x160] sm:$0xff]  ;;  %v759_v19 = vpack.c.bf16 %v340_v10, %v339_v9  ;;  %v309_v21 = vld [vmem:[%s1028_s8 + $0xf0] sm:$0xff] }
  0x4f   : > { %752 = vmatprep.subr.bf16.mxu1 %v751_v57  ;;  %v276_v17 = vld [vmem:[%s1038_s7 + $0x8] sm:$0xff]  ;;  %v324_v20 = vld [vmem:[%s1028_s8 + $0x168] sm:$0xff]  ;;  %v310_v22 = vld [vmem:[%s1028_s8 + $0xf8] sm:$0xff]  ;;  %478 = vmatprep.mubr.f32.mxu1 %v278_v18  ;;  %v729_v25 = vpack.c.bf16 %v292_v13, %v291_v12 }
  0x50   : > { %408 = vmatprep.mubr.f32.mxu0 %v276_v17  ;;  %v341_v23 = vld [vmem:[%s1028_s8 + $0x1f0] sm:$0xff]  ;;  %v342_v24 = vld [vmem:[%s1028_s8 + $0x1f8] sm:$0xff]  ;;  %v761_v26 = vpack.c.bf16 %v324_v20, %v323_v16  ;;  %v731_v27 = vpack.c.bf16 %v310_v22, %v309_v21  ;;  %v277_v36 = vld [vmem:[%s1038_s7 + $0x10] sm:$0xff] }
  0x51   : > { %722 = vmatpush3.bf16.msra.mxu0 %v721_v63  ;;  %v293_v28 = vld [vmem:[%s1028_s8 + $0x70] sm:$0xff]  ;;  %v294_v29 = vld [vmem:[%s1028_s8 + $0x78] sm:$0xff]  ;;  %v763_v30 = vpack.c.bf16 %v342_v24, %v341_v23 }
  0x52   : > { %754 = vmatpush3.bf16.msra.mxu1 %v753_v0  ;;  %724 = vmatprep.subr.bf16.mxu0 %v723_v1  ;;  %v325_v31 = vld [vmem:[%s1028_s8 + $0x170] sm:$0xff]  ;;  %v326_v32 = vld [vmem:[%s1028_s8 + $0x178] sm:$0xff]  ;;  %v733_v33 = vpack.c.bf16 %v294_v29, %v293_v28 }
  0x53   : > { %756 = vmatprep.subr.bf16.mxu1 %v755_v5  ;;  %v765_v34 = vpack.c.bf16 %v326_v32, %v325_v31  ;;  %v275_v35 = vld [vmem:[%s1038_s7] sm:$0xff] }
  0x54   : > { %v343_v43 = vld [vmem:[#allocation2] sm:$0xff] }
  0x55   : > { %726 = vmatpush3.bf16.msra.mxu0 %v725_v11  ;;  %v628_v47 = vld [vmem:[%s1136_s2] ss:$0 sm:$0xff] (!%p627_p7) }
  0x56   : > { %758 = vmatpush3.bf16.msra.mxu1 %v757_v14  ;;  %728 = vmatprep.subr.bf16.mxu0 %v727_v15 }
  0x57   : > { %760 = vmatprep.subr.bf16.mxu1 %v759_v19 }
  0x59   : > { %730 = vmatpush3.bf16.msra.mxu0 %v729_v25 }
  0x5a   : > { %762 = vmatpush3.bf16.msra.mxu1 %v761_v26  ;;  %732 = vmatprep.subr.bf16.mxu0 %v731_v27 }
  0x5b   : > { %764 = vmatprep.subr.bf16.mxu1 %v763_v30 }
  0x5d   : > { %734 = vmatpush3.bf16.msra.mxu0 %v733_v33 }
  0x5e   : > { %766 = vmatpush3.bf16.msra.mxu1 %v765_v34 }
  0x60   : > { %409 = vmatmul.mubr.f32.vlgmr.msra.gmra.mrb[0].mxu0 %v275_v35 }
  0x61   : > { %479 = vmatmul.mubr.f32.vlgmr.msra.gmra.mrb[0].mxu1 %v277_v36 }
 0x133   : > { %v665_v37 = vpop.f32.mrb[0].mxu0 }
 0x134   : > { %v700_v38 = vpop.f32.mrb[0].mxu1  ;;  %v666_v39 = vpop.f32.mrb[1].mxu0 }
 0x135   : > { %v667_v40 = vadd.f32 %v666_v39, %v665_v37  ;;  %v701_v41 = vpop.f32.mrb[1].mxu1 }
 0x136   : > { %v702_v42 = vadd.f32 %v701_v41, %v700_v38  ;;  %489 = sbr.rel (%p627_p7) target bundleno = 327 (0x147), region = 44 }
 0x138   : > { %v481_v44 = vadd.f32 %v702_v42, %v667_v40 }
 0x13a   : > { %v484_v45 = vadd.f32 %v481_v44, %v343_v43 }
 0x13c   : > { %485 = vst [vmem:[#allocation2] sm:$0xff] %v484_v45 }
 0x143   : > { %v490_v46 = vld [vmem:[#allocation2] sm:$0xff] }
 0x144   : > { %v498_v48 = vadd.f32 %v628_v47, %v490_v46 }
 0x146   : > { %499 = vst [vmem:[%s1137_s3] sm:$0xff] %v498_v48 }
 0x147 PF: > { %s16_s17 = sadd.s32 1, %s905_s17   ;;  %s1141_s12 = smov %s889_s13 }
 0x148   : > { %p13_p5 = scmp.ge.s32.totalorder %s16_s17, 4   ;;  %s1142_s13 = smov %s893_s14 }
 0x149   : > { %s1143_s14 = smov %s980_s24  ;;  %s1144_s15 = smov %s901_s16 }
 0x14a   : > { %s1145_s16 = smov %s1147_s19  ;;  %15 = sbr.rel (!%p13_p5) target bundleno = 4 (0x4), region = 86 }
 0x151   :  { %525 = vsyncpa [#allocation4], 1 }
 0x152   :  { %527 = vsyncpa [#allocation4 + $0x1], 1 }

</bundles_post_ra>
